<compile_context>
chip_gen: v7x
topology: tpu7x:2x2x1
jax: 0.10.0
libtpu: 0.0.40
codegen_flags: <defaults>
</compile_context>

<pallas_src>
import functools
import math

import jax
import jax.numpy as jnp
from jax import lax
from jax.experimental import pallas as pl
from jax.experimental.pallas import tpu as pltpu

EPS = 1e-6


def _layernorm(x, gamma, beta):
    # x: (rows, F); gamma/beta: (1, F). Unbiased std + eps, as torch.Tensor.std().
    n = x.shape[-1]
    mean = jnp.mean(x, axis=-1, keepdims=True)
    var = jnp.sum((x - mean) ** 2, axis=-1, keepdims=True) * (1.0 / (n - 1))
    inv = 1.0 / (jnp.sqrt(var) + EPS)          # one divide per row, not per element
    return gamma * ((x - mean) * inv) + beta


def geo_encoder_kernel(x_ref, g1_ref, b1_ref, g2_ref, b2_ref,
                       w1_ref, bw1_ref, w2_ref, bw2_ref, o_ref,
                       *, seq_len, use_bf16):
    x2 = x_ref[...]                            # (rows, F), rows = B_blk * L
    rows, f_dim = x2.shape
    b_blk = rows // seq_len

    def mm(a, b, dims):
        if use_bf16:                           # optional: MXU bf16 path (v5e/v6e/v7x)
            a = a.astype(jnp.bfloat16)
            b = b.astype(jnp.bfloat16)
        return lax.dot_general(a, b, dims, preferred_element_type=jnp.float32)

    # ---- sublayer 0: residual + self-attention on normalized input ----
    y2 = _layernorm(x2, g1_ref[...], b1_ref[...])          # (rows, F)
    y3 = y2.reshape(b_blk, seq_len, f_dim)                  # leading-dim split (layout no-op)

    q = y3 * (1.0 / math.sqrt(f_dim))                       # fold 1/sqrt(F) into Q
    # 'bqf,bkf->bqk' without materializing a transpose of y3
    scores = mm(q, y3, (((2,), (2,)), ((0,), (0,))))        # (B_blk, L, L)
    m = jnp.max(scores, axis=-1, keepdims=True)
    p = jnp.exp(scores - m)
    denom = jnp.sum(p, axis=-1, keepdims=True)
    # 'bqk,bkf->bqf'; normalize after the PV matmul (one reciprocal per row)
    attn = mm(p, y3, (((2,), (1,)), ((0,), (0,))))          # (B_blk, L, F)
    attn = attn * (1.0 / denom)
    # TODO(synk): dropout on attention probs / sublayer outputs omitted (inference mode)
    x2 = x2 + attn.reshape(rows, f_dim)

    # ---- sublayer 1: residual + position-wise FFN on normalized input ----
    y2 = _layernorm(x2, g2_ref[...], b2_ref[...])           # (rows, F)
    h = mm(y2, w1_ref[...], (((1,), (0,)), ((), ()))) + bw1_ref[...]
    h = jnp.maximum(h, 0.0)                                  # ReLU
    ffn = mm(h, w2_ref[...], (((1,), (0,)), ((), ()))) + bw2_ref[...]

    o_ref[...] = x2 + ffn


def _choose_batch_block(B, L, Fd, H, *, target_rows=512,
                        vmem_budget_bytes=24 * 1024 * 1024):
    """Pick how many batch elements to fuse per grid step."""
    b_blk = max(1, min(B, max(1, target_rows // max(L, 1))))

    def live_bytes(bb):
        rows = bb * L
        acts = 4 * rows * (4 * Fd + H) + 4 * bb * L * L      # x/y/attn/out + ffn hidden + scores
        io = 4 * 2 * 2 * rows * Fd                           # double-buffered in/out blocks
        w = 4 * 2 * (Fd * H + H * Fd + 2 * H + 4 * Fd)       # double-buffered weights (small)
        return acts + io + w

    while b_blk > 1 and live_bytes(b_blk) > vmem_budget_bytes:
        b_blk //= 2
    # keep >= 2 grid steps so both v7x TensorCores get work under "parallel"
    while b_blk > 1 and -(-B // b_blk) < 2:
        b_blk //= 2
    # make it an exact divisor of B so every block is full (no padded blocks)
    while B % b_blk != 0:
        b_blk -= 1
    return b_blk


def geo_encoder_layer(x, params, *, use_bf16_matmul=False):
    """x: (B, L, F) float32. params: dict of weights (see init_params)."""
    B, L, Fd = x.shape
    H = params["w1"].shape[1]

    b_blk = _choose_batch_block(B, L, Fd, H)
    rows_blk = b_blk * L

    # Flatten batch & sequence in HBM (free reshape): blocks become 2-D,
    # sublane-dense (rows_blk multiple of 8) and the LN/FFN path needs no
    # in-kernel relayout.
    x2 = x.reshape(B * L, Fd)

    kernel = functools.partial(geo_encoder_kernel, seq_len=L,
                               use_bf16=use_bf16_matmul)

    def full_spec(shape):
        return pl.BlockSpec(shape, lambda b: (0, 0))

    out2 = pl.pallas_call(
        kernel,
        out_shape=jax.ShapeDtypeStruct((B * L, Fd), x.dtype),
        grid_spec=pltpu.PrefetchScalarGridSpec(
            num_scalar_prefetch=0,
            grid=(B // b_blk,),
            in_specs=[
                pl.BlockSpec((rows_blk, Fd), lambda b: (b, 0)),   # x (flattened)
                full_spec((1, Fd)), full_spec((1, Fd)),            # LN1 gamma/beta
                full_spec((1, Fd)), full_spec((1, Fd)),            # LN2 gamma/beta
                full_spec((Fd, H)), full_spec((1, H)),             # FFN W1/b1
                full_spec((H, Fd)), full_spec((1, Fd)),            # FFN W2/b2
            ],
            out_specs=pl.BlockSpec((rows_blk, Fd), lambda b: (b, 0)),
        ),
        compiler_params=pltpu.CompilerParams(
            dimension_semantics=("parallel",),
            vmem_limit_bytes=48 * 1024 * 1024,   # explicit; fits v7x 64 MiB, raises v5e 16 MiB default
        ),
    )(x2, params["g1"], params["b1"], params["g2"], params["b2"],
      params["w1"], params["bw1"], params["w2"], params["bw2"])

    return out2.reshape(B, L, Fd)


def init_params(key, features, exp_factor):
    H = features * exp_factor
    k1, k2, k3, k4 = jax.random.split(key, 4)
    return {
        # LayerNorm params (default init: ones / zeros)
        "g1": jnp.ones((1, features), jnp.float32),
        "b1": jnp.zeros((1, features), jnp.float32),
        "g2": jnp.ones((1, features), jnp.float32),
        "b2": jnp.zeros((1, features), jnp.float32),
        # FFN params
        "w1": 0.05 * jax.random.normal(k1, (features, H), jnp.float32),
        "bw1": 0.05 * jax.random.normal(k2, (1, H), jnp.float32),
        "w2": 0.05 * jax.random.normal(k3, (H, features), jnp.float32),
        "bw2": 0.05 * jax.random.normal(k4, (1, features), jnp.float32),
    }


def reference(x, p):
    """Pure-JAX reference matching the PyTorch forward (eval mode)."""
    def ln(y, g, b):
        n = y.shape[-1]
        mean = jnp.mean(y, axis=-1, keepdims=True)
        std = jnp.sqrt(jnp.sum((y - mean) ** 2, axis=-1, keepdims=True) / (n - 1))
        return g * (y - mean) / (std + EPS) + b

    y = ln(x, p["g1"], p["b1"])
    scores = jnp.einsum("bqf,bkf->bqk", y, y) / math.sqrt(x.shape[-1])
    attn = jnp.einsum("bqk,bkf->bqf", jax.nn.softmax(scores, axis=-1), y)
    x = x + attn
    y = ln(x, p["g2"], p["b2"])
    h = jnp.maximum(jnp.einsum("blf,fh->blh", y, p["w1"]) + p["bw1"], 0.0)
    ffn = jnp.einsum("blh,hf->blf", h, p["w2"]) + p["bw2"]
    return x + ffn


if __name__ == "__main__":
    # dropout=0.1 in the PyTorch module -> identity at inference
    B, L, FEATURES, EXP_FACTOR = 8, 8, 32, 4

    key = jax.random.PRNGKey(0)
    kx, kp = jax.random.split(key)
    x = jax.random.normal(kx, (B, L, FEATURES), jnp.float32)
    params = init_params(kp, FEATURES, EXP_FACTOR)

    out = geo_encoder_layer(x, params)
    out = jax.block_until_ready(out)

    ref = reference(x, params)
    assert out.shape == (B, L, FEATURES)
    assert jnp.allclose(out, ref, atol=1e-4, rtol=1e-4), "mismatch vs reference"

    print("KERNEL_OK")
</pallas_src>

<mosaic_0001>
module attributes {stable_mosaic.version = 11 : i64} {
  func.func @geo_encoder_kernel(%arg0: i32, %arg1: memref<32x32xf32, #tpu.memory_space<vmem>>, %arg2: memref<1x32xf32, #tpu.memory_space<vmem>>, %arg3: memref<1x32xf32, #tpu.memory_space<vmem>>, %arg4: memref<1x32xf32, #tpu.memory_space<vmem>>, %arg5: memref<1x32xf32, #tpu.memory_space<vmem>>, %arg6: memref<32x128xf32, #tpu.memory_space<vmem>>, %arg7: memref<1x128xf32, #tpu.memory_space<vmem>>, %arg8: memref<128x32xf32, #tpu.memory_space<vmem>>, %arg9: memref<1x32xf32, #tpu.memory_space<vmem>>, %arg10: memref<32x32xf32, #tpu.memory_space<vmem>>) attributes {dimension_semantics = [#tpu.dimension_semantics<parallel>], iteration_bounds = array<i64: 2>, scalar_prefetch = 0 : i64, scratch_operands = 0 : i64, tpu.core_type = #tpu.core_type<tc>, window_params = [{transform_indices = @transform_0, window_bounds = array<i64: 32, 32>}, {pipeline_mode = #tpu.pipeline_mode<synchronous>, transform_indices = @transform_1, window_bounds = array<i64: 1, 32>}, {pipeline_mode = #tpu.pipeline_mode<synchronous>, transform_indices = @transform_2, window_bounds = array<i64: 1, 32>}, {pipeline_mode = #tpu.pipeline_mode<synchronous>, transform_indices = @transform_3, window_bounds = array<i64: 1, 32>}, {pipeline_mode = #tpu.pipeline_mode<synchronous>, transform_indices = @transform_4, window_bounds = array<i64: 1, 32>}, {pipeline_mode = #tpu.pipeline_mode<synchronous>, transform_indices = @transform_5, window_bounds = array<i64: 32, 128>}, {pipeline_mode = #tpu.pipeline_mode<synchronous>, transform_indices = @transform_6, window_bounds = array<i64: 1, 128>}, {pipeline_mode = #tpu.pipeline_mode<synchronous>, transform_indices = @transform_7, window_bounds = array<i64: 128, 32>}, {pipeline_mode = #tpu.pipeline_mode<synchronous>, transform_indices = @transform_8, window_bounds = array<i64: 1, 32>}, {transform_indices = @transform_9, window_bounds = array<i64: 32, 32>}]} {
    %c0 = arith.constant 0 : index
    %c0_0 = arith.constant 0 : index
    %0 = vector.load %arg1[%c0, %c0_0] : memref<32x32xf32, #tpu.memory_space<vmem>>, vector<32x32xf32>
    %c0_1 = arith.constant 0 : index
    %c0_2 = arith.constant 0 : index
    %1 = vector.load %arg2[%c0_1, %c0_2] : memref<1x32xf32, #tpu.memory_space<vmem>>, vector<1x32xf32>
    %c0_3 = arith.constant 0 : index
    %c0_4 = arith.constant 0 : index
    %2 = vector.load %arg3[%c0_3, %c0_4] : memref<1x32xf32, #tpu.memory_space<vmem>>, vector<1x32xf32>
    %cst = arith.constant dense<0.000000e+00> : vector<32xf32>
    %3 = vector.multi_reduction <add>, %0, %cst [1] : vector<32x32xf32> to vector<32xf32>
    %4 = vector.shape_cast %3 : vector<32xf32> to vector<32x1xf32>
    %cst_5 = arith.constant 3.200000e+01 : f32
    %5 = vector.broadcast %cst_5 : f32 to vector<32x1xf32>
    %6 = arith.divf %4, %5 : vector<32x1xf32>
    %7 = vector.broadcast %6 : vector<32x1xf32> to vector<32x32xf32>
    %8 = arith.subf %0, %7 : vector<32x32xf32>
    %9 = arith.mulf %8, %8 : vector<32x32xf32>
    %cst_6 = arith.constant dense<0.000000e+00> : vector<32xf32>
    %10 = vector.multi_reduction <add>, %9, %cst_6 [1] : vector<32x32xf32> to vector<32xf32>
    %11 = vector.shape_cast %10 : vector<32xf32> to vector<32x1xf32>
    %cst_7 = arith.constant 0.0322580636 : f32
    %12 = vector.broadcast %cst_7 : f32 to vector<32x1xf32>
    %13 = arith.mulf %11, %12 : vector<32x1xf32>
    %14 = math.sqrt %13 : vector<32x1xf32>
    %cst_8 = arith.constant 9.99999997E-7 : f32
    %15 = vector.broadcast %cst_8 : f32 to vector<32x1xf32>
    %16 = arith.addf %14, %15 : vector<32x1xf32>
    %cst_9 = arith.constant 1.000000e+00 : f32
    %17 = vector.broadcast %cst_9 : f32 to vector<32x1xf32>
    %18 = arith.divf %17, %16 : vector<32x1xf32>
    %19 = vector.broadcast %6 : vector<32x1xf32> to vector<32x32xf32>
    %20 = arith.subf %0, %19 : vector<32x32xf32>
    %21 = vector.broadcast %18 : vector<32x1xf32> to vector<32x32xf32>
    %22 = arith.mulf %20, %21 : vector<32x32xf32>
    %23 = vector.broadcast %1 : vector<1x32xf32> to vector<32x32xf32>
    %24 = arith.mulf %23, %22 : vector<32x32xf32>
    %25 = vector.broadcast %2 : vector<1x32xf32> to vector<32x32xf32>
    %26 = arith.addf %24, %25 : vector<32x32xf32>
    %27 = vector.shape_cast %26 : vector<32x32xf32> to vector<4x8x32xf32>
    %cst_10 = arith.constant 0.176776692 : f32
    %28 = vector.broadcast %cst_10 : f32 to vector<4x8x32xf32>
    %29 = arith.mulf %27, %28 : vector<4x8x32xf32>
    %cst_11 = arith.constant dense<0.000000e+00> : vector<4x8x8xf32>
    %30 = tpu.matmul %29, %27, %cst_11 {dimension_numbers = #tpu.dot_dimension_numbers<[2], [2], [1], [1], [0, 0, 0, 1, 1, 1], [0], [0]>} : vector<4x8x32xf32>, vector<4x8x32xf32>, vector<4x8x8xf32> -> vector<4x8x8xf32>
    %cst_12 = arith.constant dense<0xFF800000> : vector<4x8xf32>
    %31 = vector.multi_reduction <maximumf>, %30, %cst_12 [2] : vector<4x8x8xf32> to vector<4x8xf32>
    %32 = vector.shape_cast %31 : vector<4x8xf32> to vector<4x8x1xf32>
    %33 = vector.broadcast %32 : vector<4x8x1xf32> to vector<4x8x8xf32>
    %34 = arith.subf %30, %33 : vector<4x8x8xf32>
    %35 = math.exp %34 : vector<4x8x8xf32>
    %cst_13 = arith.constant dense<0.000000e+00> : vector<4x8xf32>
    %36 = vector.multi_reduction <add>, %35, %cst_13 [2] : vector<4x8x8xf32> to vector<4x8xf32>
    %37 = vector.shape_cast %36 : vector<4x8xf32> to vector<4x8x1xf32>
    %cst_14 = arith.constant dense<0.000000e+00> : vector<4x8x32xf32>
    %38 = tpu.matmul %35, %27, %cst_14 {dimension_numbers = #tpu.dot_dimension_numbers<[2], [1], [1], [2], [0, 0, 0, 1, 1, 2], [0], [0]>} : vector<4x8x8xf32>, vector<4x8x32xf32>, vector<4x8x32xf32> -> vector<4x8x32xf32>
    %cst_15 = arith.constant 1.000000e+00 : f32
    %39 = vector.broadcast %cst_15 : f32 to vector<4x8x1xf32>
    %40 = arith.divf %39, %37 : vector<4x8x1xf32>
    %41 = vector.broadcast %40 : vector<4x8x1xf32> to vector<4x8x32xf32>
    %42 = arith.mulf %38, %41 : vector<4x8x32xf32>
    %43 = vector.shape_cast %42 : vector<4x8x32xf32> to vector<32x32xf32>
    %44 = arith.addf %0, %43 : vector<32x32xf32>
    %c0_16 = arith.constant 0 : index
    %c0_17 = arith.constant 0 : index
    %45 = vector.load %arg4[%c0_16, %c0_17] : memref<1x32xf32, #tpu.memory_space<vmem>>, vector<1x32xf32>
    %c0_18 = arith.constant 0 : index
    %c0_19 = arith.constant 0 : index
    %46 = vector.load %arg5[%c0_18, %c0_19] : memref<1x32xf32, #tpu.memory_space<vmem>>, vector<1x32xf32>
    %cst_20 = arith.constant dense<0.000000e+00> : vector<32xf32>
    %47 = vector.multi_reduction <add>, %44, %cst_20 [1] : vector<32x32xf32> to vector<32xf32>
    %48 = vector.shape_cast %47 : vector<32xf32> to vector<32x1xf32>
    %cst_21 = arith.constant 3.200000e+01 : f32
    %49 = vector.broadcast %cst_21 : f32 to vector<32x1xf32>
    %50 = arith.divf %48, %49 : vector<32x1xf32>
    %51 = vector.broadcast %50 : vector<32x1xf32> to vector<32x32xf32>
    %52 = arith.subf %44, %51 : vector<32x32xf32>
    %53 = arith.mulf %52, %52 : vector<32x32xf32>
    %cst_22 = arith.constant dense<0.000000e+00> : vector<32xf32>
    %54 = vector.multi_reduction <add>, %53, %cst_22 [1] : vector<32x32xf32> to vector<32xf32>
    %55 = vector.shape_cast %54 : vector<32xf32> to vector<32x1xf32>
    %cst_23 = arith.constant 0.0322580636 : f32
    %56 = vector.broadcast %cst_23 : f32 to vector<32x1xf32>
    %57 = arith.mulf %55, %56 : vector<32x1xf32>
    %58 = math.sqrt %57 : vector<32x1xf32>
    %cst_24 = arith.constant 9.99999997E-7 : f32
    %59 = vector.broadcast %cst_24 : f32 to vector<32x1xf32>
    %60 = arith.addf %58, %59 : vector<32x1xf32>
    %cst_25 = arith.constant 1.000000e+00 : f32
    %61 = vector.broadcast %cst_25 : f32 to vector<32x1xf32>
    %62 = arith.divf %61, %60 : vector<32x1xf32>
    %63 = vector.broadcast %50 : vector<32x1xf32> to vector<32x32xf32>
    %64 = arith.subf %44, %63 : vector<32x32xf32>
    %65 = vector.broadcast %62 : vector<32x1xf32> to vector<32x32xf32>
    %66 = arith.mulf %64, %65 : vector<32x32xf32>
    %67 = vector.broadcast %45 : vector<1x32xf32> to vector<32x32xf32>
    %68 = arith.mulf %67, %66 : vector<32x32xf32>
    %69 = vector.broadcast %46 : vector<1x32xf32> to vector<32x32xf32>
    %70 = arith.addf %68, %69 : vector<32x32xf32>
    %c0_26 = arith.constant 0 : index
    %c0_27 = arith.constant 0 : index
    %71 = vector.load %arg6[%c0_26, %c0_27] : memref<32x128xf32, #tpu.memory_space<vmem>>, vector<32x128xf32>
    %cst_28 = arith.constant dense<0.000000e+00> : vector<32x128xf32>
    %72 = tpu.matmul %70, %71, %cst_28 {dimension_numbers = #tpu.dot_dimension_numbers<[1], [0], [0], [1], [0, 0, 1, 1], [], []>} : vector<32x32xf32>, vector<32x128xf32>, vector<32x128xf32> -> vector<32x128xf32>
    %c0_29 = arith.constant 0 : index
    %c0_30 = arith.constant 0 : index
    %73 = vector.load %arg7[%c0_29, %c0_30] : memref<1x128xf32, #tpu.memory_space<vmem>>, vector<1x128xf32>
    %74 = vector.broadcast %73 : vector<1x128xf32> to vector<32x128xf32>
    %75 = arith.addf %72, %74 : vector<32x128xf32>
    %cst_31 = arith.constant 0.000000e+00 : f32
    %76 = vector.broadcast %cst_31 : f32 to vector<32x128xf32>
    %77 = arith.maximumf %75, %76 : vector<32x128xf32>
    %c0_32 = arith.constant 0 : index
    %c0_33 = arith.constant 0 : index
    %78 = vector.load %arg8[%c0_32, %c0_33] : memref<128x32xf32, #tpu.memory_space<vmem>>, vector<128x32xf32>
    %cst_34 = arith.constant dense<0.000000e+00> : vector<32x32xf32>
    %79 = tpu.matmul %77, %78, %cst_34 {dimension_numbers = #tpu.dot_dimension_numbers<[1], [0], [0], [1], [0, 0, 1, 1], [], []>} : vector<32x128xf32>, vector<128x32xf32>, vector<32x32xf32> -> vector<32x32xf32>
    %c0_35 = arith.constant 0 : index
    %c0_36 = arith.constant 0 : index
    %80 = vector.load %arg9[%c0_35, %c0_36] : memref<1x32xf32, #tpu.memory_space<vmem>>, vector<1x32xf32>
    %81 = vector.broadcast %80 : vector<1x32xf32> to vector<32x32xf32>
    %82 = arith.addf %79, %81 : vector<32x32xf32>
    %83 = arith.addf %44, %82 : vector<32x32xf32>
    %c0_37 = arith.constant 0 : index
    %c0_38 = arith.constant 0 : index
    %84 = vector.load %arg10[%c0_37, %c0_38] : memref<32x32xf32, #tpu.memory_space<vmem>>, vector<32x32xf32>
    tpu.vector_store %arg10[%c0_37, %c0_38], %83 {strides = array<i32>} : memref<32x32xf32, #tpu.memory_space<vmem>>, vector<32x32xf32>,
    return
  }
  func.func @transform_0(%arg0: i32) -> (i32, i32) {
    %c0_i32 = arith.constant 0 : i32
    %c0_i32_0 = arith.constant 0 : i32
    return %arg0, %c0_i32 : i32, i32
  }
  func.func @transform_1(%arg0: i32) -> (i32, i32) {
    %c0_i32 = arith.constant 0 : i32
    %c0_i32_0 = arith.constant 0 : i32
    %c0_i32_1 = arith.constant 0 : i32
    return %c0_i32, %c0_i32_0 : i32, i32
  }
  func.func @transform_2(%arg0: i32) -> (i32, i32) {
    %c0_i32 = arith.constant 0 : i32
    %c0_i32_0 = arith.constant 0 : i32
    %c0_i32_1 = arith.constant 0 : i32
    return %c0_i32, %c0_i32_0 : i32, i32
  }
  func.func @transform_3(%arg0: i32) -> (i32, i32) {
    %c0_i32 = arith.constant 0 : i32
    %c0_i32_0 = arith.constant 0 : i32
    %c0_i32_1 = arith.constant 0 : i32
    return %c0_i32, %c0_i32_0 : i32, i32
  }
  func.func @transform_4(%arg0: i32) -> (i32, i32) {
    %c0_i32 = arith.constant 0 : i32
    %c0_i32_0 = arith.constant 0 : i32
    %c0_i32_1 = arith.constant 0 : i32
    return %c0_i32, %c0_i32_0 : i32, i32
  }
  func.func @transform_5(%arg0: i32) -> (i32, i32) {
    %c0_i32 = arith.constant 0 : i32
    %c0_i32_0 = arith.constant 0 : i32
    %c0_i32_1 = arith.constant 0 : i32
    return %c0_i32, %c0_i32_0 : i32, i32
  }
  func.func @transform_6(%arg0: i32) -> (i32, i32) {
    %c0_i32 = arith.constant 0 : i32
    %c0_i32_0 = arith.constant 0 : i32
    %c0_i32_1 = arith.constant 0 : i32
    return %c0_i32, %c0_i32_0 : i32, i32
  }
  func.func @transform_7(%arg0: i32) -> (i32, i32) {
    %c0_i32 = arith.constant 0 : i32
    %c0_i32_0 = arith.constant 0 : i32
    %c0_i32_1 = arith.constant 0 : i32
    return %c0_i32, %c0_i32_0 : i32, i32
  }
  func.func @transform_8(%arg0: i32) -> (i32, i32) {
    %c0_i32 = arith.constant 0 : i32
    %c0_i32_0 = arith.constant 0 : i32
    %c0_i32_1 = arith.constant 0 : i32
    return %c0_i32, %c0_i32_0 : i32, i32
  }
  func.func @transform_9(%arg0: i32) -> (i32, i32) {
    %c0_i32 = arith.constant 0 : i32
    %c0_i32_0 = arith.constant 0 : i32
    return %arg0, %c0_i32 : i32, i32
  }
}

</mosaic_0001>

<bundles_post_ra>
// kernel: tpu_custom_call.1
= control target key start
LH: loop header
LB: loop body
LE: loop exit
PB: predicated region body
PF: predicated region fallthrough
CT: control target
= control target key end

     0   :  { %s1818_s30 = smov 0   ;;  %s2068_s0 = inlined_call_operand.vmem [shape: f32[64,32], index: 0, kind: input, shape index: {}]   ;;  %s2069_s1 = inlined_call_operand.vmem [shape: f32[1,32], index: 1, kind: input, shape index: {}]   ;;  %s2070_s2 = inlined_call_operand.vmem [shape: f32[1,32], index: 2, kind: input, shape index: {}]   ;;  %s2071_s3 = inlined_call_operand.vmem [shape: f32[1,32], index: 3, kind: input, shape index: {}]   ;;  %s2072_s4 = inlined_call_operand.vmem [shape: f32[1,32], index: 4, kind: input, shape index: {}]   ;;  %s2073_s5 = inlined_call_operand.vmem [shape: f32[32,128], index: 5, kind: input, shape index: {}]   ;;  %s2074_s6 = inlined_call_operand.vmem [shape: f32[1,128], index: 6, kind: input, shape index: {}]   ;;  %s2075_s7 = inlined_call_operand.vmem [shape: f32[128,32], index: 7, kind: input, shape index: {}]   ;;  %s2076_s8 = inlined_call_operand.vmem [shape: f32[1,32], index: 8, kind: input, shape index: {}]   ;;  %s2077_s9 = inlined_call_operand.vmem [shape: f32[64,32], index: 9, kind: output, shape index: {}]  }
   0x1 LB: > { %s1491_s10 = sadd.s32 4294967295, %s1764_s30   ;;  %p1495_p0 = scmp.ge.s32.totalorder %s1764_s30, 1  ;;  %s1764_s30 = sphi %s1818_s30, %s19_s30  }
   0x2   : > { %p288_p1 = scmp.lt.s32.totalorder %s1764_s30, 3 }
   0x4   : > { %p289_p2 = pnand %p1495_p0, %p288_p1 }
   0x5   : > { %s1496_s11 = sshll.u32 (!%p289_p2), %s1491_s10, 2  ;;  %vm342_vm0 = vcmask (!%p289_p2), 261120   ;;  %v1766_v28 = vmov (!%p289_p2), 0.0   ;;  %vm1767_vm1 = vmmov (!%p289_p2), 0   ;;  %v1500_v62 = vld [vmem:[%s2069_s1] ss:$0 sm:$0xff] (!%p289_p2) }
   0x6   : > { %292 = sbr.rel (%p289_p2) target bundleno = 1710 (0x6ae), region = 56  ;;  %p325_p3 = scmp.lt.s32.totalorder (!%p289_p2), %s1496_s11, 7  ;;  %1568 = vmatprep.subr.mxu0 (!%p289_p2), %v1766_v28  ;;  %1603 = vmatprep.subr.mxu1 (!%p289_p2), %v1766_v28  ;;  %vm756_vm10 = vcmask (!%p289_p2), 64512  }
   0x7   : > { %1570 = vmatprep.mubr.msk.f32.mxu0 (!%p289_p2), %vm1767_vm1, %v1766_v28  ;;  %1605 = vmatprep.mubr.msk.f32.mxu1 (!%p289_p2), %vm1767_vm1, %v1766_v28 }
   0xd   : > { %s2079_s11 = smov (!%p325_p3, %s1496_s11), 7 }
   0xe   : > { %s1497_s12 = sshll.u32 %s2079_s11, 3 }
   0xf   : > { %s328_s15 = scalar_lea.vmem %s2068_s0, %s1497_s12  ;;  %s334_s16 = scalar_lea.vmem %s2077_s9, %s1497_s12 }
  0x10   : > { %v1834_v0 = vld [vmem:[%s328_s15] sm:$0xff]  ;;  %v1836_v1 = vld [vmem:[%s328_s15 + $0x10] sm:$0xff]  ;;  %v1838_v2 = vld [vmem:[%s328_s15 + $0x8] sm:$0xff] }
  0x11   : > { %v343_v3 = vsel %vm342_vm0, %v1834_v0, 0.0  ;;  %v349_v4 = vsel %vm342_vm0, %v1836_v1, 0.0  ;;  %v1844_v5 = vld [vmem:[%s328_s15 + $0x18] sm:$0xff]  ;;  %v346_v6 = vsel %vm342_vm0, %v1838_v2, 0.0 }
  0x12   : > { %344 = vadd.xlane.f32.xlu0 %v343_v3  ;;  %350 = vadd.xlane.f32.xlu1 %v349_v4  ;;  %v352_v7 = vsel %vm342_vm0, %v1844_v5, 0.0  ;;  %v1501_v3 = vld [vmem:[%s2070_s2] ss:$0 sm:$0xff] }
  0x16   : > { %347 = vadd.xlane.f32.xlu0 %v346_v6  ;;  %353 = vadd.xlane.f32.xlu1 %v352_v7 }
  0x9f   : > { %v345_v8 = vpop.xlane.xlu0 %344  ;;  %v351_v9 = vpop.xlane.xlu1 %350 }
  0xa0   : > { %v356_v10 = vmul.f32 0.03125, %v345_v8  ;;  %v358_v11 = vmul.f32 0.03125, %v351_v9 }
  0xa2   : > { %v1851_v12 = vsub.f32 %v1834_v0, %v356_v10  ;;  %v1854_v13 = vsub.f32 %v1836_v1, %v358_v11 }
  0xa3   : > { %v348_v14 = vpop.xlane.xlu0 %347  ;;  %v354_v15 = vpop.xlane.xlu1 %353 }
  0xa4   : > { %v357_v16 = vmul.f32 0.03125, %v348_v14  ;;  %v359_v17 = vmul.f32 0.03125, %v354_v15  ;;  %v364_v18 = vmul.f32 %v1851_v12, %v1851_v12  ;;  %v366_v19 = vmul.f32 %v1854_v13, %v1854_v13 }
  0xa6   : > { %v1861_v20 = vsub.f32 %v1838_v2, %v357_v16  ;;  %v1864_v21 = vsub.f32 %v1844_v5, %v359_v17  ;;  %v368_v22 = vsel %vm342_vm0, %v364_v18, 0.0  ;;  %v374_v23 = vsel %vm342_vm0, %v366_v19, 0.0 }
  0xa7   : > { %369 = vadd.xlane.f32.xlu0 %v368_v22 }
  0xa8   : > { %v365_v24 = vmul.f32 %v1861_v20, %v1861_v20  ;;  %v367_v25 = vmul.f32 %v1864_v21, %v1864_v21 }
  0xaa   : > { %v371_v26 = vsel %vm342_vm0, %v365_v24, 0.0  ;;  %v377_v27 = vsel %vm342_vm0, %v367_v25, 0.0 }
  0xab   : > { %375 = vadd.xlane.f32.xlu0 %v374_v23  ;;  %372 = vadd.xlane.f32.xlu1 %v371_v26 }
  0xaf   : > { %378 = vadd.xlane.f32.xlu1 %v377_v27 }
 0x134   : > { %v370_v29 = vpop.xlane.xlu0 %369 }
 0x135   : > { %v380_v30 = vmul.f32 0.032258064, %v370_v29 }
 0x137   : > { %1710 = vrsqrt.f32 %v380_v30  ;;  %vm386_vm2 = vcmp.eq.f32.partialorder %v380_v30, inf  ;;  %v389_v39 = vand.u32 2147483648, %v380_v30  ;;  %vm388_vm3 = vcmp.eq.f32.partialorder %v380_v30, 0.0 }
 0x138   : > { %v373_v31 = vpop.xlane.xlu1 %372  ;;  %v376_v32 = vpop.xlane.xlu0 %375 }
 0x139   : > { %v381_v33 = vmul.f32 0.032258064, %v373_v31  ;;  %v382_v34 = vmul.f32 0.032258064, %v376_v32 }
 0x13b   : > { %1712 = vrsqrt.f32 %v381_v33  ;;  %vm393_vm4 = vcmp.eq.f32.partialorder %v381_v33, inf  ;;  %vm395_vm5 = vcmp.eq.f32.partialorder %v381_v33, 0.0  ;;  %v396_v46 = vand.u32 2147483648, %v381_v33 }
 0x13c   : > { %1714 = vrsqrt.f32 %v382_v34  ;;  %v379_v35 = vpop.xlane.xlu1 %378  ;;  %vm400_vm6 = vcmp.eq.f32.partialorder %v382_v34, inf  ;;  %v403_v49 = vand.u32 2147483648, %v382_v34  ;;  %vm402_vm7 = vcmp.eq.f32.partialorder %v382_v34, 0.0 }
 0x13d   : > { %v383_v36 = vmul.f32 0.032258064, %v379_v35 }
 0x13f   : > { %1716 = vrsqrt.f32 %v383_v36  ;;  %vm407_vm8 = vcmp.eq.f32.partialorder %v383_v36, inf  ;;  %v410_v57 = vand.u32 2147483648, %v383_v36  ;;  %vm409_vm9 = vcmp.eq.f32.partialorder %v383_v36, 0.0 }
 0x141   : > { %v1711_v37 = vpop.eup %1710 }
 0x142   : > { %v385_v38 = vmul.f32 %v1711_v37, %v380_v30 }
 0x144   : > { %v387_v40 = vsel %vm386_vm2, %v380_v30, %v385_v38 }
 0x145   : > { %v1713_v41 = vpop.eup %1712  ;;  %v390_v42 = vsel %vm388_vm3, %v389_v39, %v387_v40 }
 0x146   : > { %v1715_v43 = vpop.eup %1714  ;;  %v392_v44 = vmul.f32 %v1713_v41, %v381_v33  ;;  %v412_v45 = vadd.f32 1e-06, %v390_v42 }
 0x147   : > { %v399_v47 = vmul.f32 %v1715_v43, %v382_v34 }
 0x148   : > { %v394_v48 = vsel %vm393_vm4, %v381_v33, %v392_v44  ;;  %1718 = vrcp.f32 %v412_v45 }
 0x149   : > { %v1717_v50 = vpop.eup %1716  ;;  %v397_v51 = vsel %vm395_vm5, %v396_v46, %v394_v48  ;;  %v401_v52 = vsel %vm400_vm6, %v382_v34, %v399_v47 }
 0x14a   : > { %v413_v53 = vadd.f32 1e-06, %v397_v51  ;;  %v404_v54 = vsel %vm402_vm7, %v403_v49, %v401_v52  ;;  %v406_v55 = vmul.f32 %v1717_v50, %v383_v36 }
 0x14b   : > { %v414_v56 = vadd.f32 1e-06, %v404_v54 }
 0x14c   : > { %1720 = vrcp.f32 %v413_v53  ;;  %v408_v58 = vsel %vm407_vm8, %v383_v36, %v406_v55 }
 0x14d   : > { %1722 = vrcp.f32 %v414_v56  ;;  %v411_v59 = vsel %vm409_vm9, %v410_v57, %v408_v58 }
 0x14e   : > { %v415_v60 = vadd.f32 1e-06, %v411_v59 }
 0x150   : > { %1724 = vrcp.f32 %v415_v60 }
 0x152   : > { %v1719_v61 = vpop.eup %1718 }
 0x153   : > { %v424_v63 = vmul.f32 %v1719_v61, %v1851_v12 }
 0x155   : > { %v434_v4 = vmul.f32 %v1500_v62, %v424_v63 }
 0x156   : > { %v1721_v6 = vpop.eup %1720 }
 0x157   : > { %v1723_v7 = vpop.eup %1722  ;;  %v444_v8 = vadd.f32 %v1501_v3, %v434_v4  ;;  %v425_v9 = vmul.f32 %v1721_v6, %v1861_v20 }
 0x158   : > { %v426_v10 = vmul.f32 %v1723_v7, %v1854_v13 }
 0x159   : > { %1569 = vmatpush3.xpose.msk.msra.mxu0 %vm342_vm0, %v444_v8  ;;  %v448_v11 = vmul.f32 0.17677669, %v444_v8  ;;  %v435_v14 = vmul.f32 %v1500_v62, %v425_v9 }
 0x15a   : > { %v1725_v15 = vpop.eup %1724  ;;  %1573 = vmatprep.subr.mxu0 %v1766_v28  ;;  %v436_v12 = vmul.f32 %v1500_v62, %v426_v10 }
 0x15b   : > { %v445_v16 = vadd.f32 %v1501_v3, %v435_v14  ;;  %v427_v17 = vmul.f32 %v1725_v15, %v1864_v21 }
 0x15c   : > { %1571 = vmatmul.mubr.msk.f32.vlgmr.msra.gmra.mrb[0].mxu0 %vm342_vm0, %v448_v11  ;;  %v446_v19 = vadd.f32 %v1501_v3, %v436_v12 }
 0x15d   : > { %1574 = vmatpush3.xpose.msk.msra.mxu0 %vm342_vm0, %v445_v16  ;;  %1575 = vmatprep.mubr.msk.f32.mxu0 %vm1767_vm1, %v1766_v28  ;;  %v449_v18 = vmul.f32 0.17677669, %v445_v16  ;;  %v437_v13 = vmul.f32 %v1500_v62, %v427_v17 }
 0x15e   : > { %1578 = vmatprep.subr.mxu0 %v1766_v28  ;;  %v450_v21 = vmul.f32 0.17677669, %v446_v19 }
 0x15f   : > { %v447_v20 = vadd.f32 %v1501_v3, %v437_v13 }
 0x160   : > { %1576 = vmatmul.mubr.msk.f32.vlgmr.msra.gmra.mrb[2].mxu0 %vm342_vm0, %v449_v18 }
 0x161   : > { %1579 = vmatpush3.xpose.msk.msra.mxu0 %vm342_vm0, %v446_v19  ;;  %1604 = vmatpush3.msra.mxu1 %v447_v20  ;;  %v451_v22 = vmul.f32 0.17677669, %v447_v20 }
 0x162   : > { %1580 = vmatprep.mubr.msk.f32.mxu0 %vm1767_vm1, %v1766_v28  ;;  %1583 = vmatprep.subr.mxu0 %v1766_v28 }
 0x164   : > { %1581 = vmatmul.mubr.msk.f32.vlgmr.msra.gmra.mrb[4].mxu0 %vm342_vm0, %v450_v21 }
 0x165   : > { %1584 = vmatpush3.xpose.msk.msra.mxu0 %vm342_vm0, %v447_v20  ;;  %1585 = vmatprep.mubr.msk.f32.mxu0 %vm1767_vm1, %v1766_v28 }
 0x166   : > { %1588 = vmatprep.subr.mxu0 %v1766_v28 }
 0x168   : > { %1586 = vmatmul.mubr.msk.f32.vlgmr.msra.gmra.mrb[6].mxu0 %vm342_vm0, %v451_v22 }
 0x169   : > { %1589 = vmatpush3.msra.mxu0 %v444_v8  ;;  %1590 = vmatprep.mubr.msk.f32.mxu0 %vm1767_vm1, %v1766_v28 }
 0x16a   : > { %1593 = vmatprep.subr.mxu0 %v1766_v28 }
 0x22f   : > { %v524_v23 = vpop.f32.mrb[0].mxu0 }
 0x230   : > { %v1572_v24 = vpop.f32.mrb[1].mxu0  ;;  %v757_v25 = vsel %vm756_vm10, %v524_v23, -inf }
 0x231   : > { %758 = vmax.xlane.f32.xlu0 %v757_v25 }
 0x233   : > { %v600_v26 = vpop.f32.mrb[2].mxu0 }
 0x234   : > { %v1577_v27 = vpop.f32.mrb[3].mxu0  ;;  %v760_v29 = vsel %vm756_vm10, %v600_v26, -inf }
 0x235   : > { %761 = vmax.xlane.f32.xlu1 %v760_v29 }
 0x237   : > { %v676_v30 = vpop.f32.mrb[4].mxu0 }
 0x238   : > { %v1582_v31 = vpop.f32.mrb[5].mxu0  ;;  %v763_v32 = vsel %vm756_vm10, %v676_v30, -inf }
 0x239   : > { %764 = vmax.xlane.f32.xlu0 %v763_v32 }
 0x23b   : > { %v752_v33 = vpop.f32.mrb[6].mxu0 }
 0x23c   : > { %v1587_v34 = vpop.f32.mrb[7].mxu0  ;;  %v766_v35 = vsel %vm756_vm10, %v752_v33, -inf }
 0x23d   : > { %767 = vmax.xlane.f32.xlu1 %v766_v35 }
 0x2be   : > { %v759_v36 = vpop.xlane.xlu0 %758 }
 0x2bf   : > { %v769_v37 = vsub.f32 %v524_v23, %v759_v36 }
 0x2c1   : > { %v773_v38 = vmul.f32 1.442695, %v769_v37 }
 0x2c2   : > { %v762_v39 = vpop.xlane.xlu1 %761 }
 0x2c3   : > { %1726 = vpow2.f32 %v773_v38  ;;  %v770_v40 = vsub.f32 %v600_v26, %v762_v39 }
 0x2c5   : > { %v775_v41 = vmul.f32 1.442695, %v770_v40  ;;  %v1207_v40 = vld [vmem:[%s2073_s5] sm:$0xff] }
 0x2c6   : > { %v765_v42 = vpop.xlane.xlu0 %764 }
 0x2c7   : > { %1728 = vpow2.f32 %v775_v41  ;;  %v771_v43 = vsub.f32 %v676_v30, %v765_v42  ;;  %v1208_v41 = vld [vmem:[%s2073_s5 + $0x8] sm:$0xff] }
 0x2c8   : > { %v1660_v42 = vpack.c.bf16 %v1208_v41, %v1207_v40 }
 0x2c9   : > { %v777_v44 = vmul.f32 1.442695, %v771_v43  ;;  %v1209_v43 = vld [vmem:[%s2073_s5 + $0x10] sm:$0xff] }
 0x2ca   : > { %v768_v45 = vpop.xlane.xlu1 %767 }
 0x2cb   : > { %1730 = vpow2.f32 %v777_v44  ;;  %v772_v46 = vsub.f32 %v752_v33, %v768_v45  ;;  %v1210_v44 = vld [vmem:[%s2073_s5 + $0x18] sm:$0xff] }
 0x2cc   : > { %v1664_v45 = vpack.c.bf16 %v1210_v44, %v1209_v43  ;;  %v1514_v44 = vld [vmem:[%s2071_s3] ss:$0 sm:$0xff] }
 0x2cd   : > { %v1727_v47 = vpop.eup %1726  ;;  %v779_v48 = vmul.f32 1.442695, %v772_v46  ;;  %v1319_v46 = vld [vmem:[%s2075_s7] sm:$0xff] }
 0x2ce   : > { %1591 = vmatmul.mubr.msk.f32.vlgmr.msra.gmra.mrb[8].mxu0 %vm756_vm10, %v1727_v47  ;;  %v781_v49 = vsel %vm756_vm10, %v1727_v47, 0.0  ;;  %v1320_v47 = vld [vmem:[%s2075_s7 + $0x8] sm:$0xff] }
 0x2cf   : > { %1732 = vpow2.f32 %v779_v48  ;;  %1594 = vmatpush3.msra.mxu0 %v445_v16  ;;  %782 = vadd.xlane.f32.xlu0 %v781_v49  ;;  %v1321_v48 = vld [vmem:[%s2075_s7 + $0x10] sm:$0xff]  ;;  %v1668_v49 = vpack.c.bf16 %v1320_v47, %v1319_v46  ;;  %v1515_v46 = vld [vmem:[%s2072_s4] ss:$0 sm:$0xff] }
 0x2d0   : > { %1595 = vmatprep.mubr.msk.f32.mxu0 %vm1767_vm1, %v1766_v28  ;;  %1598 = vmatprep.subr.mxu0 %v1766_v28 }
 0x2d1   : > { %v1729_v50 = vpop.eup %1728  ;;  %1669 = vmatprep.subr.bf16.mxu1 %v1668_v49 }
 0x2d2   : > { %1596 = vmatmul.mubr.msk.f32.vlgmr.msra.gmra.mrb[10].mxu0 %vm756_vm10, %v1729_v50  ;;  %v784_v51 = vsel %vm756_vm10, %v1729_v50, 0.0  ;;  %v1322_v50 = vld [vmem:[%s2075_s7 + $0x18] sm:$0xff] }
 0x2d3   : > { %1599 = vmatpush3.msra.mxu0 %v446_v19  ;;  %785 = vadd.xlane.f32.xlu1 %v784_v51  ;;  %v1672_v51 = vpack.c.bf16 %v1322_v50, %v1321_v48 }
 0x2d4   : > { %1600 = vmatprep.mubr.msk.f32.mxu0 %vm1767_vm1, %v1766_v28  ;;  %1661 = vmatprep.subr.bf16.mxu0 %v1660_v42 }
 0x2d5   : > { %v1731_v52 = vpop.eup %1730 }
 0x2d6   : > { %1601 = vmatmul.mubr.msk.f32.vlgmr.msra.gmra.mrb[12].mxu0 %vm756_vm10, %v1731_v52  ;;  %v787_v53 = vsel %vm756_vm10, %v1731_v52, 0.0  ;;  %v1323_v52 = vld [vmem:[%s2075_s7 + $0x20] sm:$0xff] }
 0x2d7   : > { %788 = vadd.xlane.f32.xlu0 %v787_v53  ;;  %1663 = vmatpush3.bf16.msra.mxu0 %v1660_v42  ;;  %v1324_v53 = vld [vmem:[%s2075_s7 + $0x28] sm:$0xff] }
 0x2d8   : > { %1665 = vmatprep.subr.bf16.mxu0 %v1664_v45 }
 0x2d9   : > { %v1733_v54 = vpop.eup %1732 }
 0x2da   : > { %1606 = vmatmul.mubr.msk.f32.vlgmr.msra.gmra.mrb[0].mxu1 %vm756_vm10, %v1733_v54  ;;  %v790_v55 = vsel %vm756_vm10, %v1733_v54, 0.0  ;;  %v1676_v54 = vpack.c.bf16 %v1324_v53, %v1323_v52 }
 0x2db   : > { %791 = vadd.xlane.f32.xlu1 %v790_v55  ;;  %1667 = vmatpush3.bf16.msra.mxu0 %v1664_v45  ;;  %v1325_v55 = vld [vmem:[%s2075_s7 + $0x30] sm:$0xff] }
 0x2dc   : > { %1671 = vmatpush3.bf16.msra.mxu1 %v1668_v49 }
 0x2dd   : > { %1673 = vmatprep.subr.bf16.mxu1 %v1672_v51 }
 0x2e0   : > { %1675 = vmatpush3.bf16.msra.mxu1 %v1672_v51 }
 0x2e1   : > { %1677 = vmatprep.subr.bf16.mxu1 %v1676_v54 }
 0x2e4   : > { %1679 = vmatpush3.bf16.msra.mxu1 %v1676_v54 }
 0x35c   : > { %v783_v56 = vpop.xlane.xlu0 %782 }
 0x35d   : > { %1734 = vrcp.f32 %v783_v56  ;;  %v1326_v56 = vld [vmem:[%s2075_s7 + $0x38] sm:$0xff] }
 0x360   : > { %v786_v57 = vpop.xlane.xlu1 %785 }
 0x361   : > { %1736 = vrcp.f32 %v786_v57  ;;  %v1680_v57 = vpack.c.bf16 %v1326_v56, %v1325_v55 }
 0x363   : > { %1681 = vmatprep.subr.bf16.mxu1 %v1680_v57 }
 0x364   : > { %v789_v58 = vpop.xlane.xlu0 %788  ;;  %1683 = vmatpush3.bf16.msra.mxu1 %v1680_v57 }
 0x365   : > { %1738 = vrcp.f32 %v789_v58  ;;  %v1327_v58 = vld [vmem:[%s2075_s7 + $0x40] sm:$0xff] }
 0x367   : > { %v1735_v28 = vpop.eup %1734 }
 0x368   : > { %v792_v59 = vpop.xlane.xlu1 %791 }
 0x369   : > { %1740 = vrcp.f32 %v792_v59  ;;  %v1328_v59 = vld [vmem:[%s2075_s7 + $0x48] sm:$0xff] }
 0x36b   : > { %v1737_v3 = vpop.eup %1736 }
 0x36f   : > { %v1739_v10 = vpop.eup %1738 }
 0x373   : > { %v1741_v16 = vpop.eup %1740 }
 0x3a1   : > { %v862_v60 = vpop.f32.mrb[8].mxu0 }
 0x3a2   : > { %v1093_v61 = vmul.f32 %v1735_v28, %v862_v60  ;;  %v1592_v62 = vpop.f32.mrb[9].mxu0  ;;  %v1684_v28 = vpack.c.bf16 %v1328_v59, %v1327_v58  ;;  %v1329_v60 = vld [vmem:[%s2075_s7 + $0x50] sm:$0xff] }
 0x3a4   : > { %v1929_v63 = vadd.f32 %v1093_v61, %v1834_v0  ;;  %v1330_v61 = vld [vmem:[%s2075_s7 + $0x58] sm:$0xff]  ;;  %1685 = vmatprep.subr.bf16.mxu1 %v1684_v28 }
 0x3a5   : > { %v935_v4 = vpop.f32.mrb[10].mxu0  ;;  %v1688_v62 = vpack.c.bf16 %v1330_v61, %v1329_v60  ;;  %1687 = vmatpush3.bf16.msra.mxu1 %v1684_v28 }
 0x3a6   : > { %v1094_v6 = vmul.f32 %v1737_v3, %v935_v4  ;;  %v1597_v7 = vpop.f32.mrb[11].mxu0  ;;  %v1103_v8 = vsel %vm342_vm0, %v1929_v63, 0.0  ;;  %v1331_v3 = vld [vmem:[%s2075_s7 + $0x60] sm:$0xff]  ;;  %v1332_v4 = vld [vmem:[%s2075_s7 + $0x68] sm:$0xff] }
 0x3a7   : > { %1104 = vadd.xlane.f32.xlu0 %v1103_v8  ;;  %1689 = vmatprep.subr.bf16.mxu1 %v1688_v62 }
 0x3a8   : > { %v1934_v9 = vadd.f32 %v1094_v6, %v1838_v2  ;;  %v1692_v6 = vpack.c.bf16 %v1332_v4, %v1331_v3 }
 0x3a9   : > { %v1008_v11 = vpop.f32.mrb[12].mxu0  ;;  %1691 = vmatpush3.bf16.msra.mxu1 %v1688_v62 }
 0x3aa   : > { %v1095_v14 = vmul.f32 %v1739_v10, %v1008_v11  ;;  %v1602_v15 = vpop.f32.mrb[13].mxu0  ;;  %v1106_v12 = vsel %vm342_vm0, %v1934_v9, 0.0  ;;  %1693 = vmatprep.subr.bf16.mxu1 %v1692_v6 }
 0x3ab   : > { %1107 = vadd.xlane.f32.xlu1 %v1106_v12 }
 0x3ac   : > { %v1939_v0 = vadd.f32 %v1095_v14, %v1836_v1 }
 0x3ad   : > { %v1081_v17 = vpop.f32.mrb[0].mxu1  ;;  %1695 = vmatpush3.bf16.msra.mxu1 %v1692_v6 }
 0x3ae   : > { %v1096_v18 = vmul.f32 %v1741_v16, %v1081_v17  ;;  %v1607_v13 = vpop.f32.mrb[1].mxu1  ;;  %v1109_v19 = vsel %vm342_vm0, %v1939_v0, 0.0 }
 0x3af   : > { %1110 = vadd.xlane.f32.xlu0 %v1109_v19 }
 0x3b0   : > { %v1944_v2 = vadd.f32 %v1096_v18, %v1844_v5 }
 0x3b2   : > { %v1112_v20 = vsel %vm342_vm0, %v1944_v2, 0.0 }
 0x3b3   : > { %1113 = vadd.xlane.f32.xlu1 %v1112_v20 }
 0x434   : > { %v1105_v21 = vpop.xlane.xlu0 %1104 }
 0x435   : > { %v1115_v22 = vmul.f32 0.03125, %v1105_v21 }
 0x437   : > { %v1949_v1 = vsub.f32 %v1929_v63, %v1115_v22 }
 0x438   : > { %v1108_v23 = vpop.xlane.xlu1 %1107 }
 0x439   : > { %v1116_v24 = vmul.f32 0.03125, %v1108_v23  ;;  %v1123_v25 = vmul.f32 %v1949_v1, %v1949_v1 }
 0x43b   : > { %v1954_v26 = vsub.f32 %v1934_v9, %v1116_v24  ;;  %v1127_v5 = vsel %vm342_vm0, %v1123_v25, 0.0 }
 0x43c   : > { %1128 = vadd.xlane.f32.xlu0 %v1127_v5  ;;  %v1111_v27 = vpop.xlane.xlu0 %1110 }
 0x43d   : > { %v1117_v29 = vmul.f32 0.03125, %v1111_v27  ;;  %v1124_v30 = vmul.f32 %v1954_v26, %v1954_v26 }
 0x43f   : > { %v1960_v31 = vsub.f32 %v1939_v0, %v1117_v29  ;;  %v1130_v32 = vsel %vm342_vm0, %v1124_v30, 0.0 }
 0x440   : > { %1131 = vadd.xlane.f32.xlu1 %v1130_v32  ;;  %v1114_v33 = vpop.xlane.xlu1 %1113 }
 0x441   : > { %v1118_v34 = vmul.f32 0.03125, %v1114_v33  ;;  %v1125_v35 = vmul.f32 %v1960_v31, %v1960_v31 }
 0x443   : > { %v1966_v36 = vsub.f32 %v1944_v2, %v1118_v34  ;;  %v1133_v37 = vsel %vm342_vm0, %v1125_v35, 0.0 }
 0x444   : > { %1134 = vadd.xlane.f32.xlu0 %v1133_v37 }
 0x445   : > { %v1126_v38 = vmul.f32 %v1966_v36, %v1966_v36 }
 0x447   : > { %v1136_v39 = vsel %vm342_vm0, %v1126_v38, 0.0 }
 0x448   : > { %1137 = vadd.xlane.f32.xlu1 %v1136_v39 }
 0x4c9   : > { %v1129_v7 = vpop.xlane.xlu0 %1128 }
 0x4ca   : > { %v1139_v8 = vmul.f32 0.032258064, %v1129_v7 }
 0x4cc   : > { %1742 = vrsqrt.f32 %v1139_v8  ;;  %vm1145_vm11 = vcmp.eq.f32.partialorder %v1139_v8, inf  ;;  %v1148_v13 = vand.u32 2147483648, %v1139_v8  ;;  %vm1147_vm12 = vcmp.eq.f32.partialorder %v1139_v8, 0.0 }
 0x4cd   : > { %v1132_v10 = vpop.xlane.xlu1 %1131 }
 0x4ce   : > { %v1140_v11 = vmul.f32 0.032258064, %v1132_v10 }
 0x4d0   : > { %1744 = vrsqrt.f32 %v1140_v11  ;;  %vm1152_vm13 = vcmp.eq.f32.partialorder %v1140_v11, inf  ;;  %v1155_v24 = vand.u32 2147483648, %v1140_v11  ;;  %vm1154_vm14 = vcmp.eq.f32.partialorder %v1140_v11, 0.0 }
 0x4d1   : > { %v1135_v14 = vpop.xlane.xlu0 %1134 }
 0x4d2   : > { %v1141_v15 = vmul.f32 0.032258064, %v1135_v14 }
 0x4d4   : > { %1746 = vrsqrt.f32 %v1141_v15  ;;  %vm1159_vm15 = vcmp.eq.f32.partialorder %v1141_v15, inf  ;;  %v1162_v32 = vand.u32 2147483648, %v1141_v15  ;;  %vm1161_vm1 = vcmp.eq.f32.partialorder %v1141_v15, 0.0 }
 0x4d5   : > { %v1138_v12 = vpop.xlane.xlu1 %1137 }
 0x4d6   : > { %v1743_v16 = vpop.eup %1742  ;;  %v1142_v17 = vmul.f32 0.032258064, %v1138_v12  ;;  %v1521_v12 = vld [vmem:[%s2076_s8] ss:$0 sm:$0xff] }
 0x4d7   : > { %v1144_v18 = vmul.f32 %v1743_v16, %v1139_v8 }
 0x4d8   : > { %1748 = vrsqrt.f32 %v1142_v17  ;;  %vm1166_vm2 = vcmp.eq.f32.partialorder %v1142_v17, inf  ;;  %v1169_v39 = vand.u32 2147483648, %v1142_v17  ;;  %vm1168_vm3 = vcmp.eq.f32.partialorder %v1142_v17, 0.0 }
 0x4d9   : > { %v1146_v19 = vsel %vm1145_vm11, %v1139_v8, %v1144_v18 }
 0x4da   : > { %v1745_v20 = vpop.eup %1744  ;;  %v1149_v21 = vsel %vm1147_vm12, %v1148_v13, %v1146_v19 }
 0x4db   : > { %v1171_v22 = vadd.f32 1e-06, %v1149_v21  ;;  %v1151_v23 = vmul.f32 %v1745_v20, %v1140_v11 }
 0x4dd   : > { %1750 = vrcp.f32 %v1171_v22  ;;  %v1153_v25 = vsel %vm1152_vm13, %v1140_v11, %v1151_v23 }
 0x4de   : > { %v1747_v5 = vpop.eup %1746  ;;  %v1156_v27 = vsel %vm1154_vm14, %v1155_v24, %v1153_v25 }
 0x4df   : > { %v1172_v29 = vadd.f32 1e-06, %v1156_v27  ;;  %v1158_v30 = vmul.f32 %v1747_v5, %v1141_v15 }
 0x4e1   : > { %1752 = vrcp.f32 %v1172_v29  ;;  %v1160_v33 = vsel %vm1159_vm15, %v1141_v15, %v1158_v30 }
 0x4e2   : > { %v1749_v34 = vpop.eup %1748  ;;  %v1163_v35 = vsel %vm1161_vm1, %v1162_v32, %v1160_v33 }
 0x4e3   : > { %v1173_v37 = vadd.f32 1e-06, %v1163_v35  ;;  %v1165_v38 = vmul.f32 %v1749_v34, %v1142_v17 }
 0x4e5   : > { %1754 = vrcp.f32 %v1173_v37  ;;  %v1167_v40 = vsel %vm1166_vm2, %v1142_v17, %v1165_v38 }
 0x4e6   : > { %v1170_v41 = vsel %vm1168_vm3, %v1169_v39, %v1167_v40 }
 0x4e7   : > { %v1751_v42 = vpop.eup %1750  ;;  %v1174_v43 = vadd.f32 1e-06, %v1170_v41 }
 0x4e8   : > { %v1183_v45 = vmul.f32 %v1751_v42, %v1949_v1 }
 0x4e9   : > { %1756 = vrcp.f32 %v1174_v43 }
 0x4ea   : > { %v1193_v47 = vmul.f32 %v1514_v44, %v1183_v45 }
 0x4eb   : > { %v1753_v48 = vpop.eup %1752 }
 0x4ec   : > { %v1203_v49 = vadd.f32 %v1515_v46, %v1193_v47  ;;  %v1184_v50 = vmul.f32 %v1753_v48, %v1954_v26  ;;  %v1333_v26 = vld [vmem:[%s2075_s7 + $0x70] sm:$0xff] }
 0x4ee   : > { %1616 = vmatprep.mubr.msk.f32.mxu0 %vm342_vm0, %v1203_v49  ;;  %v1194_v51 = vmul.f32 %v1514_v44, %v1184_v50 }
 0x4ef   : > { %v1755_v52 = vpop.eup %1754 }
 0x4f0   : > { %v1204_v53 = vadd.f32 %v1515_v46, %v1194_v51  ;;  %v1185_v54 = vmul.f32 %v1755_v52, %v1960_v31  ;;  %v1334_v31 = vld [vmem:[%s2075_s7 + $0x78] sm:$0xff] }
 0x4f1   : > { %v1696_v28 = vpack.c.bf16 %v1334_v31, %v1333_v26 }
 0x4f2   : > { %1617 = vmatmul.mubr.msk.f32.vlgmr.msra.gmra.mrb[14].mxu0 %vm342_vm0, %v1204_v53  ;;  %v1195_v1 = vmul.f32 %v1514_v44, %v1185_v54 }
 0x4f3   : > { %v1757_v55 = vpop.eup %1756  ;;  %1697 = vmatprep.subr.bf16.mxu1 %v1696_v28 }
 0x4f4   : > { %v1205_v56 = vadd.f32 %v1515_v46, %v1195_v1  ;;  %v1186_v57 = vmul.f32 %v1757_v55, %v1966_v36  ;;  %1699 = vmatpush3.bf16.msra.mxu1 %v1696_v28  ;;  %v1516_v36 = vld [vmem:[%s2074_s6] ss:$0 sm:$0xff] }
 0x4f6   : > { %1619 = vmatprep.mubr.msk.f32.mxu0 %vm342_vm0, %v1205_v56  ;;  %v1196_v58 = vmul.f32 %v1514_v44, %v1186_v57 }
 0x4f8   : > { %v1206_v59 = vadd.f32 %v1515_v46, %v1196_v58 }
 0x4fa   : > { %1620 = vmatmul.mubr.msk.f32.gmra.mrb[16].mxu0 %vm342_vm0, %v1206_v59 }
 0x5c5   : > { %v1618_v60 = vpop.f32.mrb[14].mxu0 }
 0x5c6   : > { %v1302_v61 = vadd.f32 %v1618_v60, %v1516_v36  ;;  %v1296_v62 = vpop.f32.mrb[15].mxu0 }
 0x5c7   : > { %v1297_v3 = vadd.f32 %v1516_v36, %v1296_v62 }
 0x5c8   : > { %v1316_v6 = vmax.f32 %v1302_v61, 0.0 }
 0x5c9   : > { %v1315_v4 = vmax.f32 %v1297_v3, 0.0 }
 0x5cb   : > { %1654 = vmatprep.mubr.f32.mxu1 %v1315_v4 }
 0x5cc   : > { %1655 = vmatmul.mubr.f32.vlgmr.msra.gmra.mrb[2].mxu1 %v1316_v6 }
 0x5cd   : > { %v1621_v7 = vpop.f32.mrb[16].mxu0 }
 0x5ce   : > { %v1312_v8 = vadd.f32 %v1621_v7, %v1516_v36  ;;  %v1306_v10 = vpop.f32.mrb[17].mxu0 }
 0x5cf   : > { %v1307_v11 = vadd.f32 %v1516_v36, %v1306_v10 }
 0x5d0   : > { %v1318_v15 = vmax.f32 %v1312_v8, 0.0 }
 0x5d1   : > { %v1317_v14 = vmax.f32 %v1307_v11, 0.0 }
 0x5d3   : > { %1657 = vmatprep.mubr.f32.mxu1 %v1317_v14 }
 0x5d4   : > { %1658 = vmatmul.mubr.f32.gmra.mrb[4].mxu1 %v1318_v15 }
 0x69f   : > { %v1656_v16 = vpop.f32.mrb[2].mxu1 }
 0x6a0   : > { %v1414_v17 = vadd.f32 %v1656_v16, %v1521_v12  ;;  %v1408_v18 = vpop.f32.mrb[3].mxu1 }
 0x6a1   : > { %v1409_v13 = vadd.f32 %v1521_v12, %v1408_v18 }
 0x6a2   : > { %v1428_v20 = vadd.f32 %v1414_v17, %v1934_v9 }
 0x6a3   : > { %v1427_v19 = vadd.f32 %v1409_v13, %v1929_v63 }
 0x6a4   : > { %1432 = vst.msk [vmem:[%s334_s16 + $0x8] sm:$0xff] %vm342_vm0, %v1428_v20 }
 0x6a5   : > { %1431 = vst.msk [vmem:[%s334_s16] sm:$0xff] %vm342_vm0, %v1427_v19 }
 0x6a7   : > { %v1659_v21 = vpop.f32.mrb[4].mxu1 }
 0x6a8   : > { %v1424_v22 = vadd.f32 %v1659_v21, %v1521_v12  ;;  %v1418_v23 = vpop.f32.mrb[5].mxu1 }
 0x6a9   : > { %v1419_v24 = vadd.f32 %v1521_v12, %v1418_v23 }
 0x6aa   : > { %v1430_v5 = vadd.f32 %v1424_v22, %v1944_v2 }
 0x6ab   : > { %v1429_v25 = vadd.f32 %v1419_v24, %v1939_v0 }
 0x6ac   : > { %1434 = vst.msk [vmem:[%s334_s16 + $0x18] sm:$0xff] %vm342_vm0, %v1430_v5 }
 0x6ad   : > { %1433 = vst.msk [vmem:[%s334_s16 + $0x10] sm:$0xff] %vm342_vm0, %v1429_v25 }
 0x6ae PF: > { %s19_s30 = sadd.s32 1, %s1764_s30  }
 0x6af   : > { %p16_p4 = scmp.ge.s32.totalorder %s19_s30, 4  }
 0x6b1   :  { %18 = sbr.rel (!%p16_p4) target bundleno = 1 (0x1), region = 86 }

</bundles_post_ra>
